<compile_context>
chip_gen: v6e
topology: v6e:2x2x1
jax: 0.10.0
libtpu: 0.0.40
codegen_flags: <defaults>
</compile_context>

<pallas_src>
import functools

import jax
import jax.numpy as jnp
from jax.experimental import pallas as pl
from jax.experimental.pallas import tpu as pltpu

HIDDEN = 64
LANE = 128


def _round_up(n, m):
    return ((n + m - 1) // m) * m


def _cdiv(a, b):
    return (a + b - 1) // b


def critic_mlp_kernel(x_ref, w1_ref, b1_ref, w2_ref, b2_ref,
                      w3_ref, b3_ref, w4_ref, b4_ref, o_ref):
    cdt = w1_ref.dtype                      # MXU-input dtype (f32 or bf16)

    # Cast the streamed x tile in-kernel (VPU op, hidden under the x DMA).
    x = x_ref[...].astype(cdt)                                        # (tb, D)

    h = jnp.dot(x, w1_ref[...], preferred_element_type=jnp.float32)
    h = jnp.maximum(h + b1_ref[...], 0.0)                             # f32 (tb, 64)

    h = jnp.dot(h.astype(cdt), w2_ref[...], preferred_element_type=jnp.float32)
    h = jnp.maximum(h + b2_ref[...], 0.0)                             # f32 (tb, 64)

    h = jnp.dot(h.astype(cdt), w3_ref[...], preferred_element_type=jnp.float32)
    h = jnp.maximum(h + b3_ref[...], 0.0)                             # f32 (tb, 64)

    out = jnp.dot(h.astype(cdt), w4_ref[...],
                  preferred_element_type=jnp.float32)                 # (tb, 1)
    o_ref[...] = (out + b4_ref[...]).astype(o_ref.dtype)


@functools.partial(jax.jit,
                   static_argnames=("block_b", "compute_dtype",
                                    "vmem_budget_bytes"))
def critic_forward(x, params, *, block_b=2048, compute_dtype=jnp.float32,
                   vmem_budget_bytes=10 * 1024 * 1024):
    """x: (B, input_size) -> (B, 1) f32.

    block_b: upper bound on batch rows per grid step (default 2048; the actual
             tile is additionally clamped by a VMEM budget, so it is safe on
             v7x's smaller VMEM as well as v5e/v6e).
    compute_dtype: jnp.float32 (exact) or jnp.bfloat16 (faster MXU; also
             recommended on v5e for wide inputs).  x itself is always read in
             its own dtype and cast in-kernel; accumulation, bias and ReLU
             stay f32.
    """
    w1, b1, w2, b2, w3, b3, w4, b4 = params
    B, D = x.shape
    x_itemsize = x.dtype.itemsize

    # --- VMEM-aware batch tile ------------------------------------------------
    # Per-row VMEM cost: x double-buffer (lane-padded to >=128) plus a couple of
    # live f32 (tb, 64->128 lane-padded) hidden intermediates.
    lane_d = max(_round_up(D, LANE), LANE)
    per_row_bytes = 2 * lane_d * x_itemsize + 2 * LANE * 4
    tb = max(8, min(int(block_b), vmem_budget_bytes // per_row_bytes))
    tb = min(tb, _round_up(B, 8))           # don't over-tile tiny batches
    tb = _round_up(tb, 8)
    num_tiles = _cdiv(B, tb)
    # v7x megacore: a single-tile grid leaves one TensorCore idle; split large
    # single-tile batches into two parallel steps.
    if num_tiles == 1 and B >= 1024:
        tb = _round_up(_cdiv(B, 2), 8)
        num_tiles = _cdiv(B, tb)

    # --- weights (tiny; kept resident in VMEM) --------------------------------
    # If calling in a tight loop with bf16, pre-cast params once outside instead.
    w1c = w1.astype(compute_dtype)
    w2c = w2.astype(compute_dtype)
    w3c = w3.astype(compute_dtype)
    w4c = w4.reshape(HIDDEN, 1).astype(compute_dtype)
    b1r = b1.reshape(1, HIDDEN).astype(jnp.float32)
    b2r = b2.reshape(1, HIDDEN).astype(jnp.float32)
    b3r = b3.reshape(1, HIDDEN).astype(jnp.float32)
    b4r = b4.reshape(1, 1).astype(jnp.float32)

    weight_spec = lambda shape: pl.BlockSpec(shape, lambda i: (0, 0))

    w_itemsize = jnp.dtype(compute_dtype).itemsize
    flops = 2 * num_tiles * tb * (D * HIDDEN + 2 * HIDDEN * HIDDEN + HIDDEN)
    bytes_accessed = (
        B * D * x_itemsize                                   # x (read as-is)
        + B * 4                                              # output (f32)
        + (D * HIDDEN + 2 * HIDDEN * HIDDEN + HIDDEN) * w_itemsize
        + (3 * HIDDEN + 1) * 4)                              # biases (f32)

    out = pl.pallas_call(
        critic_mlp_kernel,
        out_shape=jax.ShapeDtypeStruct((B, 1), jnp.float32),
        grid_spec=pltpu.PrefetchScalarGridSpec(
            num_scalar_prefetch=0,
            grid=(num_tiles,),
            in_specs=[
                pl.BlockSpec((tb, D), lambda i: (i, 0)),     # x (batch-tiled)
                weight_spec((D, HIDDEN)),                    # w1
                weight_spec((1, HIDDEN)),                    # b1
                weight_spec((HIDDEN, HIDDEN)),               # w2
                weight_spec((1, HIDDEN)),                    # b2
                weight_spec((HIDDEN, HIDDEN)),               # w3
                weight_spec((1, HIDDEN)),                    # b3
                weight_spec((HIDDEN, 1)),                    # w4
                weight_spec((1, 1)),                         # b4
            ],
            out_specs=pl.BlockSpec((tb, 1), lambda i: (i, 0)),
        ),
        compiler_params=pltpu.CompilerParams(
            dimension_semantics=("parallel",),
            vmem_limit_bytes=32 * 1024 * 1024),
        cost_estimate=pl.CostEstimate(
            flops=int(flops), transcendentals=0,
            bytes_accessed=int(bytes_accessed)),
    )(x, w1c, b1r, w2c, b2r, w3c, b3r, w4c, b4r)

    return out


def init_params(key, input_size):
    """Mimics torch.nn.Linear default weight init U(-1/sqrt(fan_in), +...);
    biases are zeroed exactly as BaseCriticNetwork.__init__ does."""
    k1, k2, k3, k4 = jax.random.split(key, 4)

    def linear_w(k, fan_in, fan_out):
        bound = 1.0 / jnp.sqrt(fan_in)
        # stored as (in, out) so the kernel computes x @ W
        return jax.random.uniform(k, (fan_in, fan_out), jnp.float32,
                                  minval=-bound, maxval=bound)

    w1 = linear_w(k1, input_size, HIDDEN)
    w2 = linear_w(k2, HIDDEN, HIDDEN)
    w3 = linear_w(k3, HIDDEN, HIDDEN)
    w4 = linear_w(k4, HIDDEN, 1)
    b1 = jnp.zeros((HIDDEN,), jnp.float32)
    b2 = jnp.zeros((HIDDEN,), jnp.float32)
    b3 = jnp.zeros((HIDDEN,), jnp.float32)
    b4 = jnp.zeros((1,), jnp.float32)
    return (w1, b1, w2, b2, w3, b3, w4, b4)


def reference_forward(x, params):
    w1, b1, w2, b2, w3, b3, w4, b4 = params
    h = jnp.maximum(x @ w1 + b1, 0.0)
    h = jnp.maximum(h @ w2 + b2, 0.0)
    h = jnp.maximum(h @ w3 + b3, 0.0)
    return h @ w4.reshape(HIDDEN, 1) + b4


if __name__ == "__main__":
    key = jax.random.PRNGKey(0)
    kx1, kx2, kp = jax.random.split(key, 3)

    input_size = 32
    params = init_params(kp, input_size)

    # 1) Small ragged batch (10 rows), default tile -> single grid step with a
    #    masked tail; f32 exact check.
    x1 = jax.random.normal(kx1, (10, input_size), jnp.float32)
    out1 = jax.block_until_ready(critic_forward(x1, params))
    ref1 = reference_forward(x1, params)
    assert out1.shape == (10, 1), out1.shape
    assert jnp.allclose(out1, ref1, atol=1e-5, rtol=1e-5), \
        f"f32 max err {jnp.max(jnp.abs(out1 - ref1))}"

    # 2) Multi-tile grid (batch 40, block 16 -> 3 grid steps, ragged tail), f32.
    x2 = jax.random.normal(kx2, (40, input_size), jnp.float32)
    out2 = jax.block_until_ready(critic_forward(x2, params, block_b=16))
    ref2 = reference_forward(x2, params)
    assert out2.shape == (40, 1), out2.shape
    assert jnp.allclose(out2, ref2, atol=1e-5, rtol=1e-5), \
        f"f32 multi-tile max err {jnp.max(jnp.abs(out2 - ref2))}"

    # 3) bf16 compute path (MXU inputs bf16, x cast in-kernel, f32 accumulate).
    out3 = jax.block_until_ready(
        critic_forward(x2, params, block_b=16, compute_dtype=jnp.bfloat16))
    assert out3.shape == (40, 1), out3.shape
    assert jnp.allclose(out3, ref2, atol=5e-2, rtol=5e-2), \
        f"bf16 max err {jnp.max(jnp.abs(out3 - ref2))}"

    # TODO(synk): fit()/optimizer/target-network sync are training utilities,
    # not part of the forward pass; not implemented as kernels.
    print("KERNEL_OK")
</pallas_src>

<mosaic_0001>
module attributes {stable_mosaic.version = 11 : i64} {
  func.func @critic_mlp_kernel(%arg0: i32, %arg1: memref<16x32xf32, #tpu.memory_space<vmem>>, %arg2: memref<32x64xf32, #tpu.memory_space<vmem>>, %arg3: memref<1x64xf32, #tpu.memory_space<vmem>>, %arg4: memref<64x64xf32, #tpu.memory_space<vmem>>, %arg5: memref<1x64xf32, #tpu.memory_space<vmem>>, %arg6: memref<64x64xf32, #tpu.memory_space<vmem>>, %arg7: memref<1x64xf32, #tpu.memory_space<vmem>>, %arg8: memref<64x1xf32, #tpu.memory_space<vmem>>, %arg9: memref<1x1xf32, #tpu.memory_space<vmem>>, %arg10: memref<16x1xf32, #tpu.memory_space<vmem>>) attributes {dimension_semantics = [#tpu.dimension_semantics<parallel>], iteration_bounds = array<i64: 1>, scalar_prefetch = 0 : i64, scratch_operands = 0 : i64, tpu.core_type = #tpu.core_type<tc>, window_params = [{transform_indices = @transform_0, window_bounds = array<i64: 16, 32>}, {pipeline_mode = #tpu.pipeline_mode<synchronous>, transform_indices = @transform_1, window_bounds = array<i64: 32, 64>}, {pipeline_mode = #tpu.pipeline_mode<synchronous>, transform_indices = @transform_2, window_bounds = array<i64: 1, 64>}, {pipeline_mode = #tpu.pipeline_mode<synchronous>, transform_indices = @transform_3, window_bounds = array<i64: 64, 64>}, {pipeline_mode = #tpu.pipeline_mode<synchronous>, transform_indices = @transform_4, window_bounds = array<i64: 1, 64>}, {pipeline_mode = #tpu.pipeline_mode<synchronous>, transform_indices = @transform_5, window_bounds = array<i64: 64, 64>}, {pipeline_mode = #tpu.pipeline_mode<synchronous>, transform_indices = @transform_6, window_bounds = array<i64: 1, 64>}, {pipeline_mode = #tpu.pipeline_mode<synchronous>, transform_indices = @transform_7, window_bounds = array<i64: 64, 1>}, {pipeline_mode = #tpu.pipeline_mode<synchronous>, transform_indices = @transform_8, window_bounds = array<i64: 1, 1>}, {transform_indices = @transform_9, window_bounds = array<i64: 16, 1>}]} {
    %c0 = arith.constant 0 : index
    %c0_0 = arith.constant 0 : index
    %0 = vector.load %arg1[%c0, %c0_0] : memref<16x32xf32, #tpu.memory_space<vmem>>, vector<16x32xf32>
    %c0_1 = arith.constant 0 : index
    %c0_2 = arith.constant 0 : index
    %1 = vector.load %arg2[%c0_1, %c0_2] : memref<32x64xf32, #tpu.memory_space<vmem>>, vector<32x64xf32>
    %cst = arith.constant dense<0.000000e+00> : vector<16x64xf32>
    %2 = tpu.matmul %0, %1, %cst {dimension_numbers = #tpu.dot_dimension_numbers<[1], [0], [0], [1], [0, 0, 1, 1], [], []>} : vector<16x32xf32>, vector<32x64xf32>, vector<16x64xf32> -> vector<16x64xf32>
    %c0_3 = arith.constant 0 : index
    %c0_4 = arith.constant 0 : index
    %3 = vector.load %arg3[%c0_3, %c0_4] : memref<1x64xf32, #tpu.memory_space<vmem>>, vector<1x64xf32>
    %4 = vector.broadcast %3 : vector<1x64xf32> to vector<16x64xf32>
    %5 = arith.addf %2, %4 : vector<16x64xf32>
    %cst_5 = arith.constant 0.000000e+00 : f32
    %6 = vector.broadcast %cst_5 : f32 to vector<16x64xf32>
    %7 = arith.maximumf %5, %6 : vector<16x64xf32>
    %c0_6 = arith.constant 0 : index
    %c0_7 = arith.constant 0 : index
    %8 = vector.load %arg4[%c0_6, %c0_7] : memref<64x64xf32, #tpu.memory_space<vmem>>, vector<64x64xf32>
    %cst_8 = arith.constant dense<0.000000e+00> : vector<16x64xf32>
    %9 = tpu.matmul %7, %8, %cst_8 {dimension_numbers = #tpu.dot_dimension_numbers<[1], [0], [0], [1], [0, 0, 1, 1], [], []>} : vector<16x64xf32>, vector<64x64xf32>, vector<16x64xf32> -> vector<16x64xf32>
    %c0_9 = arith.constant 0 : index
    %c0_10 = arith.constant 0 : index
    %10 = vector.load %arg5[%c0_9, %c0_10] : memref<1x64xf32, #tpu.memory_space<vmem>>, vector<1x64xf32>
    %11 = vector.broadcast %10 : vector<1x64xf32> to vector<16x64xf32>
    %12 = arith.addf %9, %11 : vector<16x64xf32>
    %cst_11 = arith.constant 0.000000e+00 : f32
    %13 = vector.broadcast %cst_11 : f32 to vector<16x64xf32>
    %14 = arith.maximumf %12, %13 : vector<16x64xf32>
    %c0_12 = arith.constant 0 : index
    %c0_13 = arith.constant 0 : index
    %15 = vector.load %arg6[%c0_12, %c0_13] : memref<64x64xf32, #tpu.memory_space<vmem>>, vector<64x64xf32>
    %cst_14 = arith.constant dense<0.000000e+00> : vector<16x64xf32>
    %16 = tpu.matmul %14, %15, %cst_14 {dimension_numbers = #tpu.dot_dimension_numbers<[1], [0], [0], [1], [0, 0, 1, 1], [], []>} : vector<16x64xf32>, vector<64x64xf32>, vector<16x64xf32> -> vector<16x64xf32>
    %c0_15 = arith.constant 0 : index
    %c0_16 = arith.constant 0 : index
    %17 = vector.load %arg7[%c0_15, %c0_16] : memref<1x64xf32, #tpu.memory_space<vmem>>, vector<1x64xf32>
    %18 = vector.broadcast %17 : vector<1x64xf32> to vector<16x64xf32>
    %19 = arith.addf %16, %18 : vector<16x64xf32>
    %cst_17 = arith.constant 0.000000e+00 : f32
    %20 = vector.broadcast %cst_17 : f32 to vector<16x64xf32>
    %21 = arith.maximumf %19, %20 : vector<16x64xf32>
    %c0_18 = arith.constant 0 : index
    %c0_19 = arith.constant 0 : index
    %22 = vector.load %arg8[%c0_18, %c0_19] : memref<64x1xf32, #tpu.memory_space<vmem>>, vector<64x1xf32>
    %cst_20 = arith.constant dense<0.000000e+00> : vector<16x1xf32>
    %23 = tpu.matmul %21, %22, %cst_20 {dimension_numbers = #tpu.dot_dimension_numbers<[1], [0], [0], [1], [0, 0, 1, 1], [], []>} : vector<16x64xf32>, vector<64x1xf32>, vector<16x1xf32> -> vector<16x1xf32>
    %c0_21 = arith.constant 0 : index
    %c0_22 = arith.constant 0 : index
    %24 = vector.load %arg9[%c0_21, %c0_22] : memref<1x1xf32, #tpu.memory_space<vmem>>, vector<1x1xf32>
    %25 = vector.broadcast %24 : vector<1x1xf32> to vector<16x1xf32>
    %26 = arith.addf %23, %25 : vector<16x1xf32>
    %c0_23 = arith.constant 0 : index
    %c0_24 = arith.constant 0 : index
    %27 = vector.load %arg10[%c0_23, %c0_24] : memref<16x1xf32, #tpu.memory_space<vmem>>, vector<16x1xf32>
    tpu.vector_store %arg10[%c0_23, %c0_24], %26 {strides = array<i32>} : memref<16x1xf32, #tpu.memory_space<vmem>>, vector<16x1xf32>,
    return
  }
  func.func @transform_0(%arg0: i32) -> (i32, i32) {
    %c0_i32 = arith.constant 0 : i32
    %c0_i32_0 = arith.constant 0 : i32
    return %arg0, %c0_i32 : i32, i32
  }
  func.func @transform_1(%arg0: i32) -> (i32, i32) {
    %c0_i32 = arith.constant 0 : i32
    %c0_i32_0 = arith.constant 0 : i32
    %c0_i32_1 = arith.constant 0 : i32
    return %c0_i32, %c0_i32_0 : i32, i32
  }
  func.func @transform_2(%arg0: i32) -> (i32, i32) {
    %c0_i32 = arith.constant 0 : i32
    %c0_i32_0 = arith.constant 0 : i32
    %c0_i32_1 = arith.constant 0 : i32
    return %c0_i32, %c0_i32_0 : i32, i32
  }
  func.func @transform_3(%arg0: i32) -> (i32, i32) {
    %c0_i32 = arith.constant 0 : i32
    %c0_i32_0 = arith.constant 0 : i32
    %c0_i32_1 = arith.constant 0 : i32
    return %c0_i32, %c0_i32_0 : i32, i32
  }
  func.func @transform_4(%arg0: i32) -> (i32, i32) {
    %c0_i32 = arith.constant 0 : i32
    %c0_i32_0 = arith.constant 0 : i32
    %c0_i32_1 = arith.constant 0 : i32
    return %c0_i32, %c0_i32_0 : i32, i32
  }
  func.func @transform_5(%arg0: i32) -> (i32, i32) {
    %c0_i32 = arith.constant 0 : i32
    %c0_i32_0 = arith.constant 0 : i32
    %c0_i32_1 = arith.constant 0 : i32
    return %c0_i32, %c0_i32_0 : i32, i32
  }
  func.func @transform_6(%arg0: i32) -> (i32, i32) {
    %c0_i32 = arith.constant 0 : i32
    %c0_i32_0 = arith.constant 0 : i32
    %c0_i32_1 = arith.constant 0 : i32
    return %c0_i32, %c0_i32_0 : i32, i32
  }
  func.func @transform_7(%arg0: i32) -> (i32, i32) {
    %c0_i32 = arith.constant 0 : i32
    %c0_i32_0 = arith.constant 0 : i32
    %c0_i32_1 = arith.constant 0 : i32
    return %c0_i32, %c0_i32_0 : i32, i32
  }
  func.func @transform_8(%arg0: i32) -> (i32, i32) {
    %c0_i32 = arith.constant 0 : i32
    %c0_i32_0 = arith.constant 0 : i32
    %c0_i32_1 = arith.constant 0 : i32
    return %c0_i32, %c0_i32_0 : i32, i32
  }
  func.func @transform_9(%arg0: i32) -> (i32, i32) {
    %c0_i32 = arith.constant 0 : i32
    %c0_i32_0 = arith.constant 0 : i32
    return %arg0, %c0_i32 : i32, i32
  }
}

</mosaic_0001>

<bundles_post_ra>
// kernel: critic_forward.1
= control target key start
LH: loop header
LB: loop body
LE: loop exit
PB: predicated region body
PF: predicated region fallthrough
CT: control target
= control target key end

     0   :  { %s797_s0 = inlined_call_operand.hbm [shape: f32[10,32], index: 0, kind: input, shape index: {}]   ;;  %s798_s1 = inlined_call_operand.hbm [shape: f32[32,64], index: 1, kind: input, shape index: {}]   ;;  %s799_s2 = inlined_call_operand.vmem [shape: f32[1,64], index: 2, kind: input, shape index: {}]   ;;  %s800_s3 = inlined_call_operand.vmem [shape: f32[64,64], index: 3, kind: input, shape index: {}]   ;;  %s801_s4 = inlined_call_operand.vmem [shape: f32[1,64], index: 4, kind: input, shape index: {}]   ;;  %s802_s5 = inlined_call_operand.hbm [shape: f32[64,64], index: 5, kind: input, shape index: {}]   ;;  %s803_s6 = inlined_call_operand.vmem [shape: f32[1,64], index: 6, kind: input, shape index: {}]   ;;  %s804_s7 = inlined_call_operand.vmem [shape: f32[64,1], index: 7, kind: input, shape index: {}]   ;;  %s805_s8 = inlined_call_operand.<no memory space> [shape: f32[1,1], index: 8, kind: input, shape index: {}]   ;;  %s806_s9 = inlined_call_operand.vmem [shape: f32[10,1], index: 9, kind: output, shape index: {}]  }
   0x1   :  { %v14_v0 = vstv %s805_s8 }
   0x2   :  { %15 = vst [vmem:[#allocation2] sm:$0x1] %v14_v0 }
   0x3   :  { %16 = vsyncpa [#allocation4], 0 }
   0x4   :  { %17 = vsyncpa [#allocation6], 0  ;;  %s659_s11 = smov [#allocation5]   ;;  %s660_s13 = smov [#allocation3]  }
   0x5   :  { %s35_s12 = sshll.u32 %s659_s11, 4  ;;  %s23_s14 = sshll.u32 %s660_s13, 4  ;;  %s36_s12 = int_to_ptr.vmem [resolvable:$true] %s35_s12  ;;  %s24_s14 = int_to_ptr.vmem [resolvable:$true] %s23_s14 }
   0x6   :  { %s603_s15 = scalar_lea.vmem %s36_s12, 512  ;;  %p608_p1 = scmp.lt.s32.totalorder %s36_s12, %s36_s12 }
   0x7   :  { %p604_p0 = scmp.ne.s32.totalorder %s36_s12, %s603_s15  ;;  %p609_p2 = scmp.lt.s32.totalorder %s603_s15, %s603_s15 }
   0x9   :  { %p610_p3 = por %p609_p2, %p608_p1 }
   0xb   :  { %p611_p4 = pnand %p610_p3, %p604_p0 }
   0xd   :  { %614 = shalt.err (!%p611_p4)
}
   0xe   :  { %s661_s16 = smov 128   ;;  %s662_s17 = smov 8  }
   0xf   :  { %41 = dma.hbm_to_vmem [thread:$0]  %s798_s1, 512, %s36_s12, [#allocation6], %s661_s16, %s661_s16, %s662_s17  }
  0x10   :  { %s623_s19 = scalar_lea.vmem %s24_s14, 256  ;;  %p628_p6 = scmp.lt.s32.totalorder %s24_s14, %s24_s14 }
  0x11   :  { %p624_p5 = scmp.ne.s32.totalorder %s24_s14, %s623_s19  ;;  %p629_p7 = scmp.lt.s32.totalorder %s623_s19, %s623_s19 }
  0x13   :  { %p630_p8 = por %p629_p7, %p628_p6 }
  0x15   :  { %p631_p9 = pnand %p630_p8, %p624_p5 }
  0x17   :  { %634 = shalt.err (!%p631_p9)
}
  0x18   :  { %29 = dma.hbm_to_vmem [thread:$0]  %s797_s0, 256, %s24_s14, [#allocation4], %s661_s16, %s661_s16, %s662_s17  }
  0x19   :  { %s663_s22 = smov [#allocation7]  }
  0x1a   :  { %s53_s23 = sshll.u32 %s663_s22, 4  ;;  %s54_s23 = int_to_ptr.vmem [resolvable:$true] %s53_s23 }
  0x1b   :  { %s643_s24 = scalar_lea.vmem %s54_s23, 1024  ;;  %p648_p11 = scmp.lt.s32.totalorder %s54_s23, %s54_s23 }
  0x1c   :  { %p644_p10 = scmp.ne.s32.totalorder %s54_s23, %s643_s24  ;;  %p649_p12 = scmp.lt.s32.totalorder %s643_s24, %s643_s24 }
  0x1e   :  { %p650_p13 = por %p649_p12, %p648_p11 }
  0x20   :  { %p651_p0 = pnand %p650_p13, %p644_p10 }
  0x22   :  { %654 = shalt.err (!%p651_p0)
}
  0x23   :  { %59 = dma.hbm_to_vmem [thread:$0]  %s802_s5, 1024, %s54_s23, [#allocation6], %s661_s16, %s661_s16, %s662_s17  }
  0x24   :  { %655 = dma.done.wait [#allocation4], 256  }
  0x25   :  { %656 = vsyncadd [#allocation4], 4294967040 }
  0x26   :  { %657 = dma.done.wait [#allocation6], 1536  }
  0x27   :  { %658 = vsyncadd [#allocation6], 4294965760  ;;  %vm88_vm0 = vcmask 261120   ;;  %v80_v1 = vld [vmem:[#allocation5 + $0x18] sm:$0xff]  ;;  %v79_v2 = vld [vmem:[#allocation5 + $0x10] sm:$0xff]  ;;  %vm187_vm1 = vcmask 523264  }
  0x28   :  { %522 = vmatprep.subr.mxu0 %v80_v1  ;;  %v75_v3 = vld [vmem:[#allocation3] sm:$0xff]  ;;  %v78_v4 = vld [vmem:[#allocation5 + $0x8] sm:$0xff]  ;;  %v178_v6 = vld [vmem:[%s800_s3 + $0x30] sm:$0xff]  ;;  %vm465_vm2 = vcmask 7168  }
  0x29   :  { %523 = vmatpush3.msra.mxu0 %v80_v1  ;;  %530 = vmatprep.mubr.msk.f32.mxu0 %vm88_vm0, %v75_v3  ;;  %v179_v5 = vld [vmem:[%s800_s3 + $0x38] sm:$0xff]  ;;  %v177_v8 = vld [vmem:[%s800_s3 + $0x28] sm:$0xff]  ;;  %v176_v10 = vld [vmem:[%s800_s3 + $0x20] sm:$0xff] }
  0x2a   :  { %524 = vmatprep.subr.mxu0 %v79_v2  ;;  %533 = vmatprep.subr.mxu1 %v179_v5  ;;  %v77_v7 = vld [vmem:[#allocation5] sm:$0xff]  ;;  %v76_v9 = vld [vmem:[#allocation3 + $0x8] sm:$0xff]  ;;  %v172_v14 = vld [vmem:[%s800_s3] sm:$0xff] }
  0x2b   :  { %525 = vmatpush3.msra.mxu0 %v79_v2  ;;  %534 = vmatpush3.msra.mxu1 %v179_v5  ;;  %v175_v11 = vld [vmem:[%s800_s3 + $0x18] sm:$0xff]  ;;  %v174_v12 = vld [vmem:[%s800_s3 + $0x10] sm:$0xff]  ;;  %v173_v13 = vld [vmem:[%s800_s3 + $0x8] sm:$0xff] }
  0x2c   :  { %526 = vmatprep.subr.mxu0 %v78_v4  ;;  %535 = vmatprep.subr.mxu1 %v178_v6  ;;  %v278_v15 = vld [vmem:[#allocation7 + $0x38] sm:$0xff]  ;;  %v277_v16 = vld [vmem:[#allocation7 + $0x30] sm:$0xff]  ;;  %v276_v17 = vld [vmem:[#allocation7 + $0x28] sm:$0xff] }
  0x2d   :  { %527 = vmatpush3.msra.mxu0 %v78_v4  ;;  %536 = vmatpush3.msra.mxu1 %v178_v6  ;;  %v275_v18 = vld [vmem:[#allocation7 + $0x20] sm:$0xff]  ;;  %v474_v19 = vld [vmem:[%s799_s2] ss:$0 sm:$0xff]  ;;  %v274_v26 = vld [vmem:[#allocation7 + $0x18] sm:$0xff] }
  0x2e   :  { %528 = vmatprep.subr.mxu0 %v77_v7  ;;  %537 = vmatprep.subr.mxu1 %v177_v8  ;;  %v273_v27 = vld [vmem:[#allocation7 + $0x10] sm:$0xff]  ;;  %v272_v28 = vld [vmem:[#allocation7 + $0x8] sm:$0xff]  ;;  %v271_v29 = vld [vmem:[#allocation7] sm:$0xff] }
  0x2f   :  { %529 = vmatpush3.msra.mxu0 %v77_v7  ;;  %538 = vmatpush3.msra.mxu1 %v177_v8  ;;  %v376_v30 = vld [vmem:[%s804_s7 + $0x38] sm:$0xff]  ;;  %v375_v31 = vld [vmem:[%s804_s7 + $0x30] sm:$0xff]  ;;  %v374_v32 = vld [vmem:[%s804_s7 + $0x28] sm:$0xff] }
  0x30   :  { %531 = vmatmul.mubr.msk.f32.vlgmr.msra.gmra.mxu0 %vm88_vm0, %v76_v9  ;;  %539 = vmatprep.subr.mxu1 %v176_v10  ;;  %v373_v33 = vld [vmem:[%s804_s7 + $0x20] sm:$0xff]  ;;  %v372_v41 = vld [vmem:[%s804_s7 + $0x18] sm:$0xff]  ;;  %v371_v42 = vld [vmem:[%s804_s7 + $0x10] sm:$0xff] }
  0x31   :  { %540 = vmatpush3.msra.mxu1 %v176_v10  ;;  %552 = vmatprep.subr.mxu0 %v278_v15  ;;  %v477_v34 = vld [vmem:[%s801_s4] ss:$0 sm:$0xff]  ;;  %v370_v43 = vld [vmem:[%s804_s7 + $0x8] sm:$0xff] }
  0x32   :  { %541 = vmatprep.subr.mxu1 %v175_v11  ;;  %553 = vmatpush3.msra.mxu0 %v278_v15  ;;  %v369_v44 = vld [vmem:[%s804_s7] sm:$0xff] }
  0x33   :  { %542 = vmatpush3.msra.mxu1 %v175_v11  ;;  %554 = vmatprep.subr.mxu0 %v277_v16  ;;  %v480_v45 = vld [vmem:[%s803_s6] ss:$0 sm:$0xff] }
  0x34   :  { %543 = vmatprep.subr.mxu1 %v174_v12  ;;  %555 = vmatpush3.msra.mxu0 %v277_v16  ;;  %v483_v52 = vld [vmem:[#allocation2] ss:$0 sm:$0xff] }
  0x35   :  { %544 = vmatpush3.msra.mxu1 %v174_v12  ;;  %556 = vmatprep.subr.mxu0 %v276_v17 }
  0x36   :  { %545 = vmatprep.subr.mxu1 %v173_v13  ;;  %557 = vmatpush3.msra.mxu0 %v276_v17 }
  0x37   :  { %546 = vmatpush3.msra.mxu1 %v173_v13  ;;  %558 = vmatprep.subr.mxu0 %v275_v18 }
  0x38   :  { %547 = vmatprep.subr.mxu1 %v172_v14  ;;  %559 = vmatpush3.msra.mxu0 %v275_v18 }
  0x39   :  { %548 = vmatpush3.msra.mxu1 %v172_v14  ;;  %560 = vmatprep.subr.mxu0 %v274_v26 }
  0x3a   :  { %561 = vmatpush3.msra.mxu0 %v274_v26  ;;  %571 = vmatprep.subr.mxu1 %v376_v30 }
  0x3b   :  { %562 = vmatprep.subr.mxu0 %v273_v27 }
  0x3c   :  { %563 = vmatpush3.msra.mxu0 %v273_v27 }
  0x3d   :  { %564 = vmatprep.subr.mxu0 %v272_v28 }
  0x3e   :  { %565 = vmatpush3.msra.mxu0 %v272_v28 }
  0x3f   :  { %566 = vmatprep.subr.mxu0 %v271_v29 }
  0x40   :  { %567 = vmatpush3.msra.mxu0 %v271_v29 }
  0xf0   :  { %v532_v20 = vpop.f32.mrf.mxu0 }
  0xf1   :  { %v167_v21 = vadd.f32 %v532_v20, %v474_v19 }
  0xf2   :  { %v161_v22 = vpop.f32.mrf.mxu0 }
  0xf3   :  { %v162_v23 = vadd.f32 %v474_v19, %v161_v22  ;;  %v171_v25 = vmax.f32 %v167_v21, 0.0 }
  0xf5   :  { %v170_v24 = vmax.f32 %v162_v23, 0.0 }
  0xf7   :  { %549 = vmatprep.mubr.msk.f32.mxu1 %vm187_vm1, %v170_v24 }
  0xf8   :  { %550 = vmatmul.mubr.msk.f32.vlgmr.msra.gmra.mxu1 %vm187_vm1, %v171_v25 }
  0xf9   :  { %572 = vmatpush3.msra.mxu1 %v376_v30 }
  0xfa   :  { %573 = vmatprep.subr.mxu1 %v375_v31 }
  0xfb   :  { %574 = vmatpush3.msra.mxu1 %v375_v31 }
  0xfc   :  { %575 = vmatprep.subr.mxu1 %v374_v32 }
  0xfd   :  { %576 = vmatpush3.msra.mxu1 %v374_v32 }
  0xfe   :  { %577 = vmatprep.subr.mxu1 %v373_v33 }
  0xff   :  { %578 = vmatpush3.msra.mxu1 %v373_v33 }
 0x100   :  { %579 = vmatprep.subr.mxu1 %v372_v41 }
 0x101   :  { %580 = vmatpush3.msra.mxu1 %v372_v41 }
 0x102   :  { %581 = vmatprep.subr.mxu1 %v371_v42 }
 0x103   :  { %582 = vmatpush3.msra.mxu1 %v371_v42 }
 0x104   :  { %583 = vmatprep.subr.mxu1 %v370_v43 }
 0x105   :  { %584 = vmatpush3.msra.mxu1 %v370_v43 }
 0x106   :  { %585 = vmatprep.subr.mxu1 %v369_v44 }
 0x107   :  { %586 = vmatpush3.msra.mxu1 %v369_v44 }
 0x1b8   :  { %v551_v35 = vpop.f32.mrf.mxu1 }
 0x1b9   :  { %v266_v36 = vadd.f32 %v551_v35, %v477_v34 }
 0x1ba   :  { %v260_v37 = vpop.f32.mrf.mxu1 }
 0x1bb   :  { %v261_v38 = vadd.f32 %v477_v34, %v260_v37  ;;  %v270_v40 = vmax.f32 %v266_v36, 0.0 }
 0x1bd   :  { %v269_v39 = vmax.f32 %v261_v38, 0.0 }
 0x1bf   :  { %568 = vmatprep.mubr.msk.f32.mxu0 %vm187_vm1, %v269_v39 }
 0x1c0   :  { %569 = vmatmul.mubr.msk.f32.vlgmr.msra.gmra.mxu0 %vm187_vm1, %v270_v40 }
 0x280   :  { %v570_v46 = vpop.f32.mrf.mxu0 }
 0x281   :  { %v364_v47 = vadd.f32 %v570_v46, %v480_v45 }
 0x282   :  { %v358_v48 = vpop.f32.mrf.mxu0 }
 0x283   :  { %v359_v49 = vadd.f32 %v480_v45, %v358_v48  ;;  %v368_v51 = vmax.f32 %v364_v47, 0.0 }
 0x285   :  { %v367_v50 = vmax.f32 %v359_v49, 0.0 }
 0x287   :  { %587 = vmatprep.mubr.msk.f32.mxu1 %vm187_vm1, %v367_v50 }
 0x288   :  { %588 = vmatmul.mubr.msk.f32.vlgmr.msra.gmra.mxu1 %vm187_vm1, %v368_v51 }
 0x348   :  { %v589_v53 = vpop.f32.mrf.mxu1 }
 0x349   :  { %v462_v54 = vadd.f32 %v589_v53, %v483_v52 }
 0x34a   :  { %v456_v55 = vpop.f32.mrf.mxu1 }
 0x34b   :  { %467 = vst.msk [vmem:[%s806_s9 + $0x8] sm:$0xff] %vm465_vm2, %v462_v54  ;;  %v457_v56 = vadd.f32 %v483_v52, %v456_v55 }
 0x34d   :  { %466 = vst.msk [vmem:[%s806_s9] sm:$0xff] %vm465_vm2, %v457_v56 }
 0x34e   :  { %472 = vsyncpa [#allocation4], 1 }
 0x34f   :  { %473 = vsyncpa [#allocation6], 1 }

</bundles_post_ra>
